<compile_context>
chip_gen: v6e
topology: v6e:2x2x1
jax: 0.10.0
libtpu: 0.0.40
codegen_flags: <defaults>
</compile_context>

<pallas_src>
import math

import numpy as np

import jax
import jax.numpy as jnp
from jax.experimental import pallas as pl
from jax.experimental.pallas import tpu as pltpu


# --------------------------------------------------------------------------- #
# helpers
# --------------------------------------------------------------------------- #
def _round_up(x: int, m: int) -> int:
    return ((x + m - 1) // m) * m


def _int_pow(x, n: int):
    """x**n for integer n >= 1 via exponentiation-by-squaring (VPU multiplies only)."""
    assert n >= 1
    result = None
    base = x
    while n:
        if n & 1:
            result = base if result is None else result * base
        n >>= 1
        if n:
            base = base * base
    return result


def _poly_cutoff(xs, p: float):
    """PolynomialCutoff on xs = x / r_max, shape (1, tile_e).

    Factored Horner form:  cut = 1 - xs^p * (c1 - xs*(c2 - c3*xs)),
    zeroed where xs >= 1.
    """
    p = float(p)
    c1 = (p + 1.0) * (p + 2.0) / 2.0
    c2 = p * (p + 2.0)
    c3 = p * (p + 1.0) / 2.0
    if p.is_integer() and p >= 1:
        xs_p = _int_pow(xs, int(p))
    else:
        xs_p = jnp.power(xs, p)
    cut = 1.0 - xs_p * (c1 - xs * (c2 - c3 * xs))
    return jnp.where(xs < 1.0, cut, 0.0)


def _accurate_recip(x):
    """1/x: EUP approx reciprocal + one Newton refinement (near-full f32 accuracy)."""
    r = pl.reciprocal(x, approx=True)
    return r * (2.0 - x * r)


# --------------------------------------------------------------------------- #
# kernel bodies
# --------------------------------------------------------------------------- #
def _make_harmonic_kernel(r_max: float, p: float, num_basis: int):
    """Frozen default weights w_j = j*pi: sin recurrence, no weights tensor input."""
    inv_r_max = 1.0 / float(r_max)
    prefactor = 2.0 / float(r_max)

    def kernel(x_ref, o_ref):
        x = x_ref[...]                              # (1, tile_e) edge lengths
        xs = x * inv_r_max                          # (1, tile_e)

        recip_x = _accurate_recip(x)                # (1, tile_e)

        # sin(j*theta), j = 1..NB, via Chebyshev recurrence:
        #   sin((j+1)t) = 2 cos(t) sin(j t) - sin((j-1) t)
        theta = math.pi * xs
        s1 = jnp.sin(theta)
        two_c = 2.0 * jnp.cos(theta)
        rows = [s1]
        if num_basis >= 2:
            rows.append(two_c * s1)                 # sin(2t) = 2 cos(t) sin(t)
        for _ in range(2, num_basis):
            rows.append(two_c * rows[-1] - rows[-2])
        sin_all = jnp.concatenate(rows, axis=0)     # (NB, tile_e)

        cut = _poly_cutoff(xs, p)                   # (1, tile_e)
        scale = (prefactor * recip_x) * cut         # (1, tile_e), broadcasts over NB
        o_ref[...] = (sin_all * scale).astype(o_ref.dtype)

    return kernel


def _make_general_kernel(r_max: float, p: float):
    """Arbitrary (trainable) bessel weights: one sin over the full (NB, tile) block."""
    inv_r_max = 1.0 / float(r_max)
    prefactor = 2.0 / float(r_max)

    def kernel(w_ref, x_ref, o_ref):
        x = x_ref[...]                              # (1, tile_e)
        w = w_ref[...]                              # (NB, 1)
        xs = x * inv_r_max

        recip_x = _accurate_recip(x)

        sin_all = jnp.sin(w * xs)                   # (NB, tile_e)
        cut = _poly_cutoff(xs, p)
        scale = (prefactor * recip_x) * cut
        o_ref[...] = (sin_all * scale).astype(o_ref.dtype)

    return kernel


# --------------------------------------------------------------------------- #
# wrapper
# --------------------------------------------------------------------------- #
def _weights_are_default_harmonic(bessel_weights, num_basis: int) -> bool:
    """True iff weights are concretely available and equal j*pi (frozen default)."""
    try:
        w_np = np.asarray(bessel_weights, dtype=np.float64)
    except Exception:
        return False  # traced / abstract -> cannot prove, use general path
    target = np.arange(1, num_basis + 1, dtype=np.float64) * np.pi
    return bool(np.allclose(w_np, target, rtol=1e-6, atol=1e-6))


def radial_basis_edge_encoding(edge_lengths: jax.Array,
                               bessel_weights: jax.Array,
                               *,
                               r_max: float,
                               p: float,
                               tile_e: int = 8192,
                               out_dtype=jnp.float32,
                               harmonic: bool | None = None) -> jax.Array:
    """edge_lengths: [E] f32, bessel_weights: [num_basis] f32 -> [E, num_basis]."""
    E = int(edge_lengths.shape[0])
    num_basis = int(bessel_weights.shape[0])

    if harmonic is None:
        harmonic = _weights_are_default_harmonic(bessel_weights, num_basis)

    # Lane-major tiling: edges on the 128-lane axis, basis on sublanes.
    tile = min(int(tile_e), _round_up(E, 128))
    tile = max(128, (tile // 128) * 128)
    e_pad = _round_up(E, tile)
    grid = (e_pad // tile,)

    x = edge_lengths.astype(jnp.float32)
    if e_pad != E:
        # Pad with r_max: padded rows hit cutoff==0 exactly, so no NaN/Inf from
        # sin(0)/0 in the padded region (they are sliced away afterwards anyway).
        x = jnp.concatenate(
            [x, jnp.full((e_pad - E,), float(r_max), dtype=jnp.float32)])
    x2d = x.reshape(1, e_pad)

    x_spec = pl.BlockSpec((1, tile), lambda i: (0, i))
    out_spec = pl.BlockSpec((num_basis, tile), lambda i: (0, i))
    out_shape = jax.ShapeDtypeStruct((num_basis, e_pad), out_dtype)
    cparams = pltpu.CompilerParams(dimension_semantics=("parallel",))

    if harmonic:
        out_pad = pl.pallas_call(
            _make_harmonic_kernel(float(r_max), float(p), num_basis),
            out_shape=out_shape,
            grid_spec=pltpu.PrefetchScalarGridSpec(
                num_scalar_prefetch=0,
                grid=grid,
                in_specs=[x_spec],
                out_specs=out_spec),
            compiler_params=cparams,
        )(x2d)
    else:
        w2d = bessel_weights.astype(jnp.float32).reshape(num_basis, 1)
        out_pad = pl.pallas_call(
            _make_general_kernel(float(r_max), float(p)),
            out_shape=out_shape,
            grid_spec=pltpu.PrefetchScalarGridSpec(
                num_scalar_prefetch=0,
                grid=grid,
                in_specs=[pl.BlockSpec((num_basis, 1), lambda i: (0, 0)), x_spec],
                out_specs=out_spec),
            compiler_params=cparams,
        )(w2d, x2d)

    # Return the module's [E, num_basis] layout (slice + transpose in XLA).
    # TODO(synk): let downstream consumers take the lane-dense [NB, E] layout
    # directly to skip this transpose entirely.
    return out_pad[:, :E].T


# --------------------------------------------------------------------------- #
# pure-JAX reference (matches the PyTorch module)
# --------------------------------------------------------------------------- #
def _reference(edge_lengths, bessel_weights, r_max, p):
    x = edge_lengths.astype(jnp.float32)[:, None]                    # [E, 1]
    w = bessel_weights.astype(jnp.float32)[None, :]                   # [1, NB]
    bessel = (2.0 / r_max) * jnp.sin(w * x / r_max) / x
    xs = x / r_max
    p = float(p)
    cut = (1.0
           - ((p + 1.0) * (p + 2.0) / 2.0) * xs ** p
           + p * (p + 2.0) * xs ** (p + 1.0)
           - (p * (p + 1.0) / 2.0) * xs ** (p + 2.0))
    cut = cut * (xs < 1.0)
    return bessel * cut


if __name__ == "__main__":
    # Module config (from_config defaults): r_max cutoff, 8 bessel basis, p=6.
    r_max = 5.0
    num_basis = 8
    p = 6.0
    E = 2000  # deliberately NOT a multiple of 128/tile to exercise the padding path

    # BesselBasis default init: linspace(1, num_basis, num_basis) * pi
    bessel_weights = jnp.linspace(1.0, float(num_basis), num_basis,
                                  dtype=jnp.float32) * math.pi

    key = jax.random.PRNGKey(0)
    edge_lengths = jax.random.uniform(key, (E,), dtype=jnp.float32,
                                      minval=0.1, maxval=1.1 * r_max)

    # 1) Default (frozen j*pi) weights -> harmonic sin-recurrence kernel.
    out = radial_basis_edge_encoding(edge_lengths, bessel_weights,
                                     r_max=r_max, p=p, tile_e=512)
    out = jax.block_until_ready(out)
    ref = _reference(edge_lengths, bessel_weights, r_max, p)
    assert out.shape == (E, num_basis), out.shape
    if not jnp.allclose(out, ref, atol=3e-5, rtol=1e-4):
        max_err = jnp.max(jnp.abs(out - ref))
        raise AssertionError(f"harmonic-path kernel mismatch (max abs err {max_err})")

    # 2) Perturbed ("trained") weights -> general full-block-sin kernel path.
    w_train = bessel_weights * (1.0 + 0.01 * jnp.arange(num_basis, dtype=jnp.float32))
    out2 = radial_basis_edge_encoding(edge_lengths, w_train,
                                      r_max=r_max, p=p, tile_e=512)
    out2 = jax.block_until_ready(out2)
    ref2 = _reference(edge_lengths, w_train, r_max, p)
    if not jnp.allclose(out2, ref2, atol=3e-5, rtol=1e-4):
        max_err = jnp.max(jnp.abs(out2 - ref2))
        raise AssertionError(f"general-path kernel mismatch (max abs err {max_err})")

    print("KERNEL_OK")
</pallas_src>

<mosaic_0001>
module attributes {stable_mosaic.version = 11 : i64} {
  func.func @kernel(%arg0: i32, %arg1: memref<1x512xf32, #tpu.memory_space<vmem>>, %arg2: memref<8x512xf32, #tpu.memory_space<vmem>>) attributes {dimension_semantics = [#tpu.dimension_semantics<parallel>], iteration_bounds = array<i64: 4>, scalar_prefetch = 0 : i64, scratch_operands = 0 : i64, tpu.core_type = #tpu.core_type<tc>, window_params = [{transform_indices = @transform_0, window_bounds = array<i64: 1, 512>}, {transform_indices = @transform_1, window_bounds = array<i64: 8, 512>}]} {
    %c0 = arith.constant 0 : index
    %c0_0 = arith.constant 0 : index
    %0 = vector.load %arg1[%c0, %c0_0] : memref<1x512xf32, #tpu.memory_space<vmem>>, vector<1x512xf32>
    %cst = arith.constant 2.000000e-01 : f32
    %1 = vector.broadcast %cst : f32 to vector<1x512xf32>
    %2 = arith.mulf %0, %1 : vector<1x512xf32>
    %3 = tpu.reciprocal %0 {approx = true} : vector<1x512xf32> -> vector<1x512xf32>
    %4 = arith.mulf %0, %3 : vector<1x512xf32>
    %cst_1 = arith.constant 2.000000e+00 : f32
    %5 = vector.broadcast %cst_1 : f32 to vector<1x512xf32>
    %6 = arith.subf %5, %4 : vector<1x512xf32>
    %7 = arith.mulf %3, %6 : vector<1x512xf32>
    %cst_2 = arith.constant 3.14159274 : f32
    %8 = vector.broadcast %cst_2 : f32 to vector<1x512xf32>
    %9 = arith.mulf %8, %2 : vector<1x512xf32>
    %10 = math.sin %9 : vector<1x512xf32>
    %11 = math.cos %9 : vector<1x512xf32>
    %cst_3 = arith.constant 2.000000e+00 : f32
    %12 = vector.broadcast %cst_3 : f32 to vector<1x512xf32>
    %13 = arith.mulf %12, %11 : vector<1x512xf32>
    %14 = arith.mulf %13, %10 : vector<1x512xf32>
    %15 = arith.mulf %13, %14 : vector<1x512xf32>
    %16 = arith.subf %15, %10 : vector<1x512xf32>
    %17 = arith.mulf %13, %16 : vector<1x512xf32>
    %18 = arith.subf %17, %14 : vector<1x512xf32>
    %19 = arith.mulf %13, %18 : vector<1x512xf32>
    %20 = arith.subf %19, %16 : vector<1x512xf32>
    %21 = arith.mulf %13, %20 : vector<1x512xf32>
    %22 = arith.subf %21, %18 : vector<1x512xf32>
    %23 = arith.mulf %13, %22 : vector<1x512xf32>
    %24 = arith.subf %23, %20 : vector<1x512xf32>
    %25 = arith.mulf %13, %24 : vector<1x512xf32>
    %26 = arith.subf %25, %22 : vector<1x512xf32>
    %27 = tpu.concatenate %10, %14, %16, %18, %20, %22, %24, %26 in 0 : vector<1x512xf32>, vector<1x512xf32>, vector<1x512xf32>, vector<1x512xf32>, vector<1x512xf32>, vector<1x512xf32>, vector<1x512xf32>, vector<1x512xf32> -> vector<8x512xf32>
    %28 = arith.mulf %2, %2 : vector<1x512xf32>
    %29 = arith.mulf %28, %28 : vector<1x512xf32>
    %30 = arith.mulf %28, %29 : vector<1x512xf32>
    %cst_4 = arith.constant 2.100000e+01 : f32
    %31 = vector.broadcast %cst_4 : f32 to vector<1x512xf32>
    %32 = arith.mulf %31, %2 : vector<1x512xf32>
    %cst_5 = arith.constant 4.800000e+01 : f32
    %33 = vector.broadcast %cst_5 : f32 to vector<1x512xf32>
    %34 = arith.subf %33, %32 : vector<1x512xf32>
    %35 = arith.mulf %2, %34 : vector<1x512xf32>
    %cst_6 = arith.constant 2.800000e+01 : f32
    %36 = vector.broadcast %cst_6 : f32 to vector<1x512xf32>
    %37 = arith.subf %36, %35 : vector<1x512xf32>
    %38 = arith.mulf %30, %37 : vector<1x512xf32>
    %cst_7 = arith.constant 1.000000e+00 : f32
    %39 = vector.broadcast %cst_7 : f32 to vector<1x512xf32>
    %40 = arith.subf %39, %38 : vector<1x512xf32>
    %cst_8 = arith.constant 1.000000e+00 : f32
    %41 = vector.broadcast %cst_8 : f32 to vector<1x512xf32>
    %42 = arith.cmpf olt, %2, %41 : vector<1x512xf32>
    %cst_9 = arith.constant 0.000000e+00 : f32
    %43 = vector.broadcast %cst_9 : f32 to vector<1x512xf32>
    %44 = arith.select %42, %40, %43 : vector<1x512xi1>, vector<1x512xf32>
    %cst_10 = arith.constant 4.000000e-01 : f32
    %45 = vector.broadcast %cst_10 : f32 to vector<1x512xf32>
    %46 = arith.mulf %45, %7 : vector<1x512xf32>
    %47 = arith.mulf %46, %44 : vector<1x512xf32>
    %48 = vector.broadcast %47 : vector<1x512xf32> to vector<8x512xf32>
    %49 = arith.mulf %27, %48 : vector<8x512xf32>
    %c0_11 = arith.constant 0 : index
    %c0_12 = arith.constant 0 : index
    %50 = vector.load %arg2[%c0_11, %c0_12] : memref<8x512xf32, #tpu.memory_space<vmem>>, vector<8x512xf32>
    tpu.vector_store %arg2[%c0_11, %c0_12], %49 {strides = array<i32>} : memref<8x512xf32, #tpu.memory_space<vmem>>, vector<8x512xf32>,
    return
  }
  func.func @transform_0(%arg0: i32) -> (i32, i32) {
    %c0_i32 = arith.constant 0 : i32
    %c0_i32_0 = arith.constant 0 : i32
    return %c0_i32, %arg0 : i32, i32
  }
  func.func @transform_1(%arg0: i32) -> (i32, i32) {
    %c0_i32 = arith.constant 0 : i32
    %c0_i32_0 = arith.constant 0 : i32
    return %c0_i32, %arg0 : i32, i32
  }
}

</mosaic_0001>

<bundles_post_ra>
// kernel: tpu_custom_call.1
= control target key start
LH: loop header
LB: loop body
LE: loop exit
PB: predicated region body
PF: predicated region fallthrough
CT: control target
= control target key end

     0   :  { %6 = vsyncpa [#allocation3], 0  ;;  %s1138_s0 = inlined_call_operand.hbm [shape: f32[1,2048], index: 0, kind: input, shape index: {}]   ;;  %s1139_s1 = inlined_call_operand.hbm [shape: f32[8,2048], index: 1, kind: output, shape index: {}]  }
   0x1   :  { %8 = vsyncpa [#allocation3 + $0x1], 0 }
   0x2   :  { %9 = vsyncpa [#allocation4], 0 }
   0x3   :  { %11 = vsyncpa [#allocation4 + $0x1], 0  ;;  %s891_s6 = smov 0   ;;  %s893_s7 = smov 0  }
   0x4   :  { %s895_s8 = smov 0   ;;  %s897_s9 = smov 0  }
   0x5 LB: > { %s912_s10 = sadd.s32 4294967295, %s871_s9   ;;  %s693_s11 = sadd.s32 4294967294, %s871_s9   ;;  %s871_s9 = sphi %s897_s9, %s1155_s9   ;;  %s867_s8 = sphi %s895_s8, %s1154_s8   ;;  %s863_s7 = sphi %s893_s7, %s1153_s7   ;;  %s859_s6 = sphi %s891_s6, %s1152_s6  }
   0x6   : > { %s916_s12 = sadd.s32 1, %s871_s9   ;;  %s24_s13 = sadd.s32 1, %s867_s8 }
   0x7   : > { %s21_s14 = ssub.s32 %s871_s9, %s916_s12  ;;  %p31_p0 = scmp.ne.s32.totalorder %s867_s8, %s863_s7 }
   0x8   : > { %p22_p1 = scmp.eq.s32.totalorder %s21_s14, 0  ;;  %p32_p2 = scmp.eq.s32.totalorder %s871_s9, 0 }
   0x9   : > { %p37_p3 = scmp.ne.s32.totalorder %s863_s7, %s859_s6  ;;  %p38_p4 = scmp.eq.s32.totalorder %s912_s10, 0 }
   0xa   : > { %s928_s15 = scalar_select %p22_p1, %s867_s8, %s24_s13  }
   0xb   : > { %p930_p5 = por %p32_p2, %p31_p0  ;;  %p934_p6 = por %p38_p4, %p37_p3 }
   0xc   : > { %p61_p7 = scmp.eq.s32.totalorder %s912_s10, 3  ;;  %p67_p8 = scmp.eq.s32.totalorder %s693_s11, 3 }
   0xd   : > { %s1143_s17 = scalar_select %p934_p6, 1, 0 }
   0xe   : > { %p733_p9 = scmp.lt.s32.totalorder %s871_s9, 4  ;;  %p940_p10 = por %p61_p7, %p31_p0 }
   0xf   : > { %p944_p11 = por %p67_p8, %p37_p3  ;;  %s87_s20 = sand.u32 1, %s867_s8  }
  0x10   : > { %s1144_s18 = scalar_select %p940_p10, 1, 0 }
  0x11   : > { %s1145_s19 = scalar_select %p944_p11, 1, 0 }
  0x12   : > { %s715_s21 = sshll.u32 %s871_s9, 6  ;;  %s696_s22 = sshll.u32 %s87_s20, 2 }
  0x13   : > { %s953_s25 = scalar_lea.hbm %s1138_s0, %s715_s21  ;;  %s91_s26 = scalar_lea.vmem [#allocation2], %s696_s22 }
  0x14   : > { %s99_s27 = sshll.u32 %s91_s26, 4  ;;  %p957_p12 = pnand %p733_p9, %p930_p5  ;;  %s961_s27 = int_to_ptr.vmem [resolvable:$true] %s99_s27 }
  0x15   : > { %s88_s29 = scalar_lea.sflag [#allocation3], %s87_s20  ;;  %s779_s30 = scalar_lea.hbm %s953_s25, 64 }
  0x16   : > { %p780_p1 = scmp.ne.s32.totalorder %s953_s25, %s779_s30  ;;  %p781_p2 = pneg %p957_p12 }
  0x17   : > { %s784_s4 = scalar_lea.hbm %s1138_s0, 256  ;;  %p785_p5 = scmp.lt.s32.totalorder %s953_s25, %s1138_s0 }
  0x18   : > { %p782_p3 = pnand %p781_p2, %p780_p1  ;;  %p786_p7 = scmp.lt.s32.totalorder %s784_s4, %s779_s30 }
  0x1a   : > { %p783_p4 = pneg %p782_p3  ;;  %p787_p8 = por %p786_p7, %p785_p5 }
  0x1c   : > { %p788_p9 = pnand %p787_p8, %p783_p4 }
  0x1e   : > { %791 = shalt.err (!%p788_p9)
}
  0x1f   : > { %s792_s13 = scalar_lea.vmem %s961_s27, 64  ;;  %s873_s14 = smov [#allocation2]  }
  0x20   : > { %p793_p13 = scmp.ne.s32.totalorder %s961_s27, %s792_s13  ;;  %s797_s16 = sshll.u32 %s873_s14, 4  ;;  %s798_s16 = int_to_ptr.vmem [resolvable:$false] %s797_s16 }
  0x21   : > { %s799_s20 = scalar_lea.vmem %s798_s16, 128  ;;  %p800_p3 = scmp.lt.s32.totalorder %s961_s27, %s798_s16 }
  0x22   : > { %p795_p0 = pnand %p793_p13, %p781_p2  ;;  %p801_p11 = scmp.lt.s32.totalorder %s799_s20, %s792_s13 }
  0x24   : > { %p796_p1 = pneg %p795_p0  ;;  %p802_p10 = por %p801_p11, %p800_p3 }
  0x26   : > { %p803_p6 = pnand %p802_p10, %p796_p1 }
  0x28   : > { %806 = shalt.err (!%p803_p6)
}
  0x29   : > { %728 = dma.hbm_to_vmem [thread:$0]  (!%p957_p12), %s953_s25, 64, %s961_s27, %s88_s29  }
  0x2a   : > { %p1147_p4 = scmp.lt.s32.totalorder %s871_s9, 5  ;;  %p1148_p5 = scmp.ge.s32.totalorder %s871_s9, 1 }
  0x2c   : > { %p105_p13 = pnand %p1148_p5, %p1147_p4 }
  0x2d   : > { %s988_s21 = sand.u32 (!%p105_p13), 1, %s863_s7   ;;  %p1149_p6 = scmp.ne.s32.totalorder (!%p105_p13), %s1143_s17, 0 }
  0x2e   : > { %108 = sbr.rel (%p105_p13) target bundleno = 187 (0xbb), region = 24  ;;  %s700_s22 = sshll.u32 (!%p105_p13), %s988_s21, 2 }
  0x2f   : > { %s111_s23 = scalar_lea.sflag (!%p105_p13), [#allocation3], %s988_s21  ;;  %s114_s24 = scalar_lea.vmem (!%p105_p13), [#allocation2], %s700_s22 }
  0x33   : > { %850 = dma.done.wait (%p1149_p6), %s111_s23, 64  }
  0x34   : > { %852 = vsyncadd (%p1149_p6), %s111_s23, 4294967232  ;;  %v135_v0 = vld [vmem:[%s114_s24] sm:$0xf]  ;;  %v874_v26 = vmov 683565275   ;;  %s701_s17 = sshll.u32 %s988_s21, 5 }
  0x35   : > { %v136_v1 = vmul.f32 0.2, %v135_v0  ;;  %773 = vrcp.f32 %v135_v0  ;;  %v875_v28 = vmov 2475754826   ;;  %v876_v30 = vmov 2131351028  }
  0x36   : > { %v877_v32 = vmov 2102212464   ;;  %v878_v34 = vmov 920167782   ;;  %v879_v43 = vmov 1326507024  }
  0x37   : > { %v996_v2 = vmul.f32 3.1415927, %v136_v1  ;;  %v566_v3 = vmul.f32 %v136_v1, %v136_v1  ;;  %v569_v4 = vmul.f32 21.0, %v136_v1  ;;  %vm575_vm1 = vcmp.lt.f32.partialorder %v136_v1, 1.0  ;;  %s132_s25 = scalar_lea.vmem [#allocation5], %s701_s17  ;;  %s716_s27 = sshll.u32 %s912_s10, 9 }
  0x38   : > { %s623_s26 = sshll.u32 %s132_s25, 4  ;;  %s1098_s29 = scalar_lea.hbm %s1139_s1, %s716_s27  ;;  %s1093_s26 = int_to_ptr.vmem [resolvable:$true] %s623_s26 }
  0x39   : > { %v145_v5 = vand.u32 2139095040, %v996_v2  ;;  %v567_v6 = vmul.f32 %v566_v3, %v566_v3  ;;  %v570_v7 = vsub.f32 48.0, %v569_v4  ;;  %v142_v9 = vand.u32 2147483647, %v996_v2  ;;  %s609_s30 = scalar_lea.sflag [#allocation4], %s988_s21  ;;  %s807_s2 = scalar_lea.vmem %s1093_s26, 512 }
  0x3a   : > { %vm144_vm8 = vcmp.lt.s32.totalorder %v996_v2, 0  ;;  %p808_p10 = scmp.ne.s32.totalorder %s1093_s26, %s807_s2  ;;  %p1150_p11 = scmp.ne.s32.totalorder %s1144_s18, 0 }
  0x3b   : > { %v146_v8 = vshrl.u32 %v145_v5, 23  ;;  %v568_v10 = vmul.f32 %v567_v6, %v566_v3  ;;  %v571_v11 = vmul.f32 %v570_v7, %v136_v1  ;;  %v149_v15 = vand.u32 8388607, %v142_v9  ;;  %s880_s3 = smov [#allocation5]  }
  0x3c   : > { %vm143_vm9 = vcmp.le.f32.partialorder %v142_v9, 0.7853982  ;;  %p809_p12 = pnand %p808_p10, %p1150_p11  ;;  %s811_s4 = sshll.u32 %s880_s3, 4  ;;  %s812_s4 = int_to_ptr.vmem [resolvable:$false] %s811_s4 }
  0x3d   : > { %v702_v12 = vadd.s32 4294967169, %v146_v8  ;;  %v572_v13 = vsub.f32 28.0, %v571_v11  ;;  %v150_v22 = vor.u32 8388608, %v149_v15  ;;  %s813_s5 = scalar_lea.vmem %s812_s4, 1024  ;;  %p814_p2 = scmp.lt.s32.totalorder %s1093_s26, %s812_s4 }
  0x3e   : > { %p810_p0 = pneg %p809_p12  ;;  %p815_p7 = scmp.lt.s32.totalorder %s813_s5, %s807_s2 }
  0x3f   : > { %v152_v14 = vadd.s32 1, %v702_v12  ;;  %v573_v16 = vmul.f32 %v572_v13, %v568_v10  ;;  %v190_v53 = vshll.u32 %v150_v22, 8 }
  0x40   : > { %p816_p8 = por %p815_p7, %p814_p2 }
  0x41   : > { %vm153_vm0 = vcmp.gt.s32.totalorder %v152_v14, 0  ;;  %v574_v19 = vsub.f32 1.0, %v573_v16 }
  0x42   : > { %v774_v17 = vpop.eup %773  ;;  %v154_v18 = vsel %vm153_vm0, %v152_v14, 0  ;;  %vm234_vm0 = vweird.f32 %v996_v2  ;;  %p817_p9 = pnand %p816_p8, %p810_p0 }
  0x43   : > { %v138_v20 = vmul.f32 %v774_v17, %v135_v0  ;;  %v156_v21 = vand.u32 31, %v154_v18  ;;  %v155_v23 = vshrl.u32 %v154_v18, 5  ;;  %v576_v36 = vsel %vm575_vm1, %v574_v19, 0.0 }
  0x44   : > { %vm531_vm1 = vcmask 1040384  }
  0x45   : > { %v139_v24 = vsub.f32 2.0, %v138_v20  ;;  %v157_v25 = vsub.s32 32, %v156_v21  ;;  %v159_v27 = vshll.u32 %v874_v26, %v156_v21  ;;  %v162_v29 = vshll.u32 %v875_v28, %v156_v21 }
  0x46   : > { %v165_v31 = vshll.u32 %v876_v30, %v156_v21  ;;  %v168_v33 = vshll.u32 %v877_v32, %v156_v21  ;;  %v171_v35 = vshll.u32 %v878_v34, %v156_v21  ;;  %vm174_vm2 = vcmp.lt.s32.totalorder %v155_v23, 1 }
  0x47   : > { %v140_v37 = vmul.f32 %v774_v17, %v139_v24  ;;  %v158_v38 = vshrl.u32 %v874_v26, %v157_v25  ;;  %v160_v39 = vshrl.u32 %v875_v28, %v157_v25  ;;  %v163_v40 = vshrl.u32 %v876_v30, %v157_v25 }
  0x48   : > { %v166_v41 = vshrl.u32 %v877_v32, %v157_v25  ;;  %v169_v42 = vshrl.u32 %v878_v34, %v157_v25  ;;  %v172_v44 = vshrl.u32 %v879_v43, %v157_v25  ;;  %vm176_vm3 = vcmp.lt.s32.totalorder %v155_v23, 3 }
  0x49   : > { %v161_v45 = vor.u32 %v160_v39, %v159_v27  ;;  %v164_v46 = vor.u32 %v163_v40, %v162_v29  ;;  %vm177_vm4 = vcmp.lt.s32.totalorder %v155_v23, 4  ;;  %v577_v50 = vmul.f32 0.4, %v140_v37 }
  0x4a   : > { %v167_v47 = vor.u32 %v166_v41, %v165_v31  ;;  %v170_v48 = vor.u32 %v169_v42, %v168_v33  ;;  %v173_v49 = vor.u32 %v172_v44, %v171_v35  ;;  %vm175_vm5 = vcmp.lt.s32.totalorder %v155_v23, 2 }
  0x4b   : > { %v178_v51 = vsel %vm174_vm2, %v158_v38, %v161_v45  ;;  %v182_v52 = vsel %vm174_vm2, %v161_v45, %v164_v46  ;;  %v1005_v61 = vmul.f32 %v577_v50, %v576_v36  ;;  %v364_v41 = vlaneseq }
  0x4c   : > { %v179_v54 = vsel %vm177_vm4, %v167_v47, 2102212464  ;;  %v183_v55 = vsel %vm177_vm4, %v170_v48, 920167782  ;;  %v186_v56 = vsel %vm174_vm2, %v164_v46, %v167_v47  ;;  %v187_v57 = vsel %vm177_vm4, %v173_v49, 1326507024 }
  0x4d   : > { %v180_v58 = vsel %vm176_vm3, %v164_v46, %v179_v54  ;;  %v184_v59 = vsel %vm176_vm3, %v167_v47, %v183_v55  ;;  %v188_v60 = vsel %vm176_vm3, %v170_v48, %v187_v57  ;;  %v365_v9 = vshrl.u32 %v364_v41, 7 }
  0x4e   : > { %v181_v62 = vsel %vm175_vm5, %v178_v51, %v180_v58  ;;  %v185_v63 = vsel %vm175_vm5, %v182_v52, %v184_v59  ;;  %v189_v0 = vsel %vm175_vm5, %v186_v56, %v188_v60  ;;  %vm536_vm2 = vcmask 1041408  }
  0x4f   : > { %v1007_v1 = vmul.u32.u64.low %v190_v53, %v189_v0  ;;  %v1008_v3 = vmul.u32.u64.high %v190_v53, %v189_v0, %v1007_v1  ;;  %v1010_v4 = vmul.u32.u64.low %v190_v53, %v185_v63  ;;  %v1011_v5 = vmul.u32.u64.high %v190_v53, %v185_v63, %v1010_v4 }
  0x50   : > { %v197_v6 = vmul.u32 %v190_v53, %v181_v62  ;;  %v1022_v52 = vsub.s32 0, %v365_v9  ;;  %v1024_v53 = vsub.s32 1, %v365_v9  ;;  %v1026_v56 = vsub.s32 2, %v365_v9 }
  0x51   : > { %vm199_vm6 = vc.u32 %v1008_v3, %v1010_v4  ;;  %v200_v7 = vadd.s32 1, %v1011_v5  ;;  %v198_v19 = vadd.s32 %v1010_v4, %v1008_v3  ;;  %v1028_v57 = vsub.s32 3, %v365_v9 }
  0x52   : > { %vm541_vm3 = vcmask 1042432   ;;  %vm546_vm4 = vcmask 1043456   ;;  %vm551_vm5 = vcmask 1044480  }
  0x53   : > { %v201_v8 = vsel %vm199_vm6, %v200_v7, %v1011_v5  ;;  %vm556_vm6 = vcmask 1045504  }
  0x54   : > { %v202_v10 = vadd.s32 %v201_v8, %v197_v6 }
  0x56   : > { %v203_v11 = vadd.s32 536870912, %v202_v10 }
  0x58   : > { %v204_v12 = vshrl.u32 %v203_v11, 30 }
  0x5a   : > { %v205_v13 = vshll.u32 %v204_v12, 30  ;;  %v228_v32 = vsub.s32 4, %v204_v12 }
  0x5c   : > { %v206_v14 = vsub.s32 %v202_v10, %v205_v13  ;;  %v229_v35 = vsel %vm144_vm8, %v228_v32, %v204_v12 }
  0x5d   : > { %v231_v37 = vsel %vm143_vm9, 0, %v229_v35 }
  0x5e   : > { %v208_v15 = vsub.s32 0, %v206_v14  ;;  %v235_v38 = vadd.s32 3, %v231_v37  ;;  %v339_v40 = vand.u32 3, %v231_v37 }
  0x60   : > { %v703_v16 = vmin.u32 %v208_v15, %v206_v14  ;;  %v236_v39 = vand.u32 3, %v235_v38  ;;  %vm344_vm11 = vcmp.eq.s32.totalorder %v339_v40, 2  ;;  %vm341_vm13 = vcmp.eq.s32.totalorder %v339_v40, 0 }
  0x61   : > { %vm340_vm15 = vcmp.lt.s32.totalorder %v339_v40, 2 }
  0x62   : > { %v210_v17 = vclz %v703_v16  ;;  %vm241_vm10 = vcmp.eq.s32.totalorder %v236_v39, 2  ;;  %vm238_vm12 = vcmp.eq.s32.totalorder %v236_v39, 0  ;;  %vm237_vm14 = vcmp.lt.s32.totalorder %v236_v39, 2 }
  0x64   : > { %v704_v18 = vadd.s32 4294967294, %v210_v17 }
  0x66   : > { %vm705_vm7 = vcmp.lt.s32.totalorder %v704_v18, 0 }
  0x67   : > { %v213_v20 = vsel %vm705_vm7, 0, %v704_v18  ;;  %vm561_vm7 = vcmask 1046528  }
  0x68   : > { %v214_v21 = vsub.s32 32, %v213_v20  ;;  %v215_v22 = vshll.u32 %v206_v14, %v213_v20  ;;  %v218_v23 = vsub.s32 4294967266, %v213_v20 }
  0x6a   : > { %v216_v24 = vshrl.u32 %v198_v19, %v214_v21  ;;  %v219_v25 = vadd.s32 127, %v218_v23 }
  0x6c   : > { %v217_v26 = vor.u32 %v216_v24, %v215_v22  ;;  %v220_v27 = vshll.u32 %v219_v25, 23 }
  0x6e   : > { %v221_v28 = vor.u32 4788187, %v220_v27  ;;  %v224_v29 = vcvt.s32.f32 %v217_v26 }
  0x70   : > { %v222_v30 = vand.u32 2147483647, %v221_v28 }
  0x72   : > { %v225_v31 = vmul.f32 %v224_v29, %v222_v30 }
  0x74   : > { %v226_v33 = vxor.u32 2147483648, %v225_v31 }
  0x76   : > { %v227_v34 = vsel %vm144_vm8, %v226_v33, %v225_v31 }
  0x77   : > { %v230_v36 = vsel %vm143_vm9, %v996_v2, %v227_v34 }
  0x78   : > { %775 = vcosq.f32 %v230_v36 }
  0x79   : > { %777 = vsinq.f32 %v230_v36 }
  0x85   : > { %v776_v42 = vpop.eup %775 }
  0x86   : > { %v778_v43 = vpop.eup %777  ;;  %v242_v44 = vxor.u32 2147483648, %v776_v42 }
  0x87   : > { %v239_v45 = vxor.u32 2147483648, %v778_v43 }
  0x88   : > { %v243_v46 = vsel %vm241_vm10, %v242_v44, %v778_v43  ;;  %v346_v47 = vsel %vm344_vm11, %v242_v44, %v778_v43 }
  0x89   : > { %v240_v48 = vsel %vm238_vm12, %v776_v42, %v239_v45  ;;  %v343_v49 = vsel %vm341_vm13, %v776_v42, %v239_v45 }
  0x8a   : > { %v244_v50 = vsel %vm237_vm14, %v240_v48, %v243_v46  ;;  %v347_v51 = vsel %vm340_vm15, %v343_v49, %v346_v47 }
  0x8b   : > { %v245_v54 = vsel %vm234_vm0, nan, %v244_v50  ;;  %v348_v55 = vsel %vm234_vm0, nan, %v347_v51 }
  0x8c   : > { %v1030_v58 = vmul.f32 2.0, %v348_v55  ;;  %v367_v59 = vrot.slane %v245_v54, %v1022_v52  ;;  %v371_v60 = vrot.slane %v245_v54, %v1024_v53  ;;  %v375_v62 = vrot.slane %v245_v54, %v1026_v56 }
  0x8d   : > { %v379_v63 = vrot.slane %v245_v54, %v1028_v57 }
  0x8e   : > { %v350_v2 = vmul.f32 %v1030_v58, %v245_v54 }
  0x90   : > { %v351_v0 = vmul.f32 %v350_v2, %v1030_v58  ;;  %v388_v1 = vrot.slane %v350_v2, %v1022_v52  ;;  %v392_v3 = vrot.slane %v350_v2, %v1024_v53  ;;  %v396_v4 = vrot.slane %v350_v2, %v1026_v56 }
  0x91   : > { %v400_v5 = vrot.slane %v350_v2, %v1028_v57 }
  0x92   : > { %v352_v6 = vsub.f32 %v351_v0, %v245_v54  ;;  %v532_v7 = vsel %vm531_vm1, %v367_v59, %v388_v1  ;;  %v533_v8 = vsel %vm531_vm1, %v371_v60, %v392_v3  ;;  %v534_v10 = vsel %vm531_vm1, %v375_v62, %v396_v4 }
  0x93   : > { %v535_v11 = vsel %vm531_vm1, %v379_v63, %v400_v5  ;;  %v583_v59 = vrot.slane %v1005_v61, %v1022_v52  ;;  %v587_v63 = vrot.slane %v1005_v61, %v1024_v53  ;;  %v595_v0 = vrot.slane %v1005_v61, %v1028_v57 }
  0x94   : > { %v353_v12 = vmul.f32 %v352_v6, %v1030_v58  ;;  %v409_v13 = vrot.slane %v352_v6, %v1022_v52  ;;  %v413_v14 = vrot.slane %v352_v6, %v1024_v53  ;;  %v417_v15 = vrot.slane %v352_v6, %v1026_v56 }
  0x95   : > { %v421_v16 = vrot.slane %v352_v6, %v1028_v57 }
  0x96   : > { %v354_v17 = vsub.f32 %v353_v12, %v350_v2  ;;  %v537_v18 = vsel %vm536_vm2, %v532_v7, %v409_v13  ;;  %v538_v19 = vsel %vm536_vm2, %v533_v8, %v413_v14  ;;  %v539_v20 = vsel %vm536_vm2, %v534_v10, %v417_v15 }
  0x97   : > { %v540_v21 = vsel %vm536_vm2, %v535_v11, %v421_v16 }
  0x98   : > { %v355_v22 = vmul.f32 %v354_v17, %v1030_v58  ;;  %v430_v23 = vrot.slane %v354_v17, %v1022_v52  ;;  %v434_v24 = vrot.slane %v354_v17, %v1024_v53  ;;  %v438_v25 = vrot.slane %v354_v17, %v1026_v56 }
  0x99   : > { %v442_v26 = vrot.slane %v354_v17, %v1028_v57 }
  0x9a   : > { %v356_v27 = vsub.f32 %v355_v22, %v352_v6  ;;  %v542_v28 = vsel %vm541_vm3, %v537_v18, %v430_v23  ;;  %v543_v29 = vsel %vm541_vm3, %v538_v19, %v434_v24  ;;  %v544_v30 = vsel %vm541_vm3, %v539_v20, %v438_v25 }
  0x9b   : > { %v545_v31 = vsel %vm541_vm3, %v540_v21, %v442_v26 }
  0x9c   : > { %v357_v32 = vmul.f32 %v356_v27, %v1030_v58  ;;  %v451_v33 = vrot.slane %v356_v27, %v1022_v52  ;;  %v455_v34 = vrot.slane %v356_v27, %v1024_v53  ;;  %v459_v35 = vrot.slane %v356_v27, %v1026_v56 }
  0x9d   : > { %v463_v36 = vrot.slane %v356_v27, %v1028_v57 }
  0x9e   : > { %v358_v37 = vsub.f32 %v357_v32, %v354_v17  ;;  %v547_v38 = vsel %vm546_vm4, %v542_v28, %v451_v33  ;;  %v548_v39 = vsel %vm546_vm4, %v543_v29, %v455_v34  ;;  %v549_v40 = vsel %vm546_vm4, %v544_v30, %v459_v35 }
  0x9f   : > { %v550_v41 = vsel %vm546_vm4, %v545_v31, %v463_v36 }
  0xa0   : > { %v359_v42 = vmul.f32 %v358_v37, %v1030_v58  ;;  %v472_v43 = vrot.slane %v358_v37, %v1022_v52  ;;  %v476_v44 = vrot.slane %v358_v37, %v1024_v53  ;;  %v480_v9 = vrot.slane %v358_v37, %v1026_v56 }
  0xa1   : > { %v484_v45 = vrot.slane %v358_v37, %v1028_v57 }
  0xa2   : > { %v360_v46 = vsub.f32 %v359_v42, %v356_v27  ;;  %v552_v47 = vsel %vm551_vm5, %v547_v38, %v472_v43  ;;  %v553_v48 = vsel %vm551_vm5, %v548_v39, %v476_v44  ;;  %v554_v49 = vsel %vm551_vm5, %v549_v40, %v480_v9 }
  0xa3   : > { %v555_v50 = vsel %vm551_vm5, %v550_v41, %v484_v45 }
  0xa4   : > { %v361_v51 = vmul.f32 %v360_v46, %v1030_v58  ;;  %v493_v54 = vrot.slane %v360_v46, %v1022_v52  ;;  %v497_v55 = vrot.slane %v360_v46, %v1024_v53  ;;  %v501_v2 = vrot.slane %v360_v46, %v1026_v56 }
  0xa5   : > { %v505_v60 = vrot.slane %v360_v46, %v1028_v57  ;;  %v591_v58 = vrot.slane %v1005_v61, %v1026_v56 }
  0xa6   : > { %v362_v62 = vsub.f32 %v361_v51, %v358_v37  ;;  %v557_v1 = vsel %vm556_vm6, %v552_v47, %v493_v54  ;;  %v558_v3 = vsel %vm556_vm6, %v553_v48, %v497_v55  ;;  %v559_v4 = vsel %vm556_vm6, %v554_v49, %v501_v2 }
  0xa7   : > { %v560_v5 = vsel %vm556_vm6, %v555_v50, %v505_v60 }
  0xa8   : > { %v514_v6 = vrot.slane %v362_v62, %v1022_v52  ;;  %v518_v7 = vrot.slane %v362_v62, %v1024_v53  ;;  %v522_v8 = vrot.slane %v362_v62, %v1026_v56  ;;  %v526_v10 = vrot.slane %v362_v62, %v1028_v57 }
  0xaa   : > { %v562_v61 = vsel %vm561_vm7, %v557_v1, %v514_v6  ;;  %v563_v11 = vsel %vm561_vm7, %v558_v3, %v518_v7  ;;  %v564_v12 = vsel %vm561_vm7, %v559_v4, %v522_v8  ;;  %v565_v13 = vsel %vm561_vm7, %v560_v5, %v526_v10 }
  0xab   : > { %v600_v52 = vmul.f32 %v583_v59, %v562_v61  ;;  %v601_v53 = vmul.f32 %v587_v63, %v563_v11  ;;  %v602_v56 = vmul.f32 %v591_v58, %v564_v12  ;;  %v603_v57 = vmul.f32 %v595_v0, %v565_v13 }
  0xad   : > { %604 = vst [vmem:[%s132_s25] sm:$0xff] %v600_v52  ;;  %605 = vst [vmem:[%s132_s25 + $0x8] sm:$0xff] %v601_v53 }
  0xae   : > { %606 = vst [vmem:[%s132_s25 + $0x10] sm:$0xff] %v602_v56  ;;  %607 = vst [vmem:[%s132_s25 + $0x18] sm:$0xff] %v603_v57 }
  0xaf   : > { %820 = shalt.err (!%p817_p9)
}
  0xb0   : > { %s821_s11 = scalar_lea.hbm %s1098_s29, 512  ;;  %s825_s16 = scalar_lea.hbm %s1139_s1, 2048 }
  0xb1   : > { %p822_p1 = scmp.ne.s32.totalorder %s1098_s29, %s821_s11  ;;  %p826_p5 = scmp.lt.s32.totalorder %s1098_s29, %s1139_s1 }
  0xb2   : > { %p827_p13 = scmp.lt.s32.totalorder %s825_s16, %s821_s11 }
  0xb3   : > { %p823_p3 = pnand %p822_p1, %p1150_p11 }
  0xb4   : > { %p828_p6 = por %p827_p13, %p826_p5 }
  0xb5   : > { %p824_p4 = pneg %p823_p3 }
  0xb7   : > { %p829_p10 = pnand %p828_p6, %p824_p4 }
  0xb9   : > { %832 = shalt.err (!%p829_p10)
}
  0xba   : > { %723 = dma.vmem_to_hbm [thread:$0]  (%p1150_p11), %s1093_s26, 512, %s1098_s29, %s609_s30  }
  0xbb PF: > { %p734_p12 = scmp.ge.s32.totalorder %s871_s9, 2  ;;  %s635_s22 = sand.u32 1, %s859_s6  }
  0xbc   : > { %p1151_p0 = scmp.ne.s32.totalorder %s1145_s19, 0  ;;  %s636_s23 = scalar_lea.sflag [#allocation4], %s635_s22 }
  0xbe   : > { %p730_p2 = pnand %p734_p12, %p1151_p0 }
  0xc0   : > { %p731_p7 = pneg %p730_p2 }
  0xc2   : > { %854 = dma.done.wait (%p731_p7), %s636_s23, 512  }
  0xc3   : > { %856 = vsyncadd (%p731_p7), %s636_s23, 4294966784  ;;  %p14_p8 = scmp.ge.s32.totalorder %s916_s12, 6   ;;  %s1152_s6 = smov %s863_s7 }
  0xc4   : > { %s1153_s7 = smov %s867_s8  ;;  %s1154_s8 = smov %s928_s15 }
  0xc5   : > { %s1155_s9 = smov %s916_s12  ;;  %16 = sbr.rel (!%p14_p8) target bundleno = 5 (0x5), region = 69 }
  0xca   :  { %641 = vsyncpa [#allocation3], 1 }
  0xcb   :  { %643 = vsyncpa [#allocation3 + $0x1], 1 }
  0xcc   :  { %644 = vsyncpa [#allocation4], 1 }
  0xcd   :  { %646 = vsyncpa [#allocation4 + $0x1], 1 }

</bundles_post_ra>
